<compile_context>
chip_gen: v7x
topology: tpu7x:2x2x1
jax: 0.10.0
libtpu: 0.0.40
codegen_flags: <defaults>
</compile_context>

<pallas_src>
import numpy as np
import jax
import jax.numpy as jnp
from jax.experimental import pallas as pl
from jax.experimental.pallas import tpu as pltpu

D_PAD = 128   # emb_size (100) zero-padded to one full lane tile
H1 = 64       # first MLP hidden width


# ----------------------------------------------------------------------------
# Fused kernel: propagation + gather + concat + MLP head.
# ----------------------------------------------------------------------------
def gcf_fused_kernel(uidx_ref, iidx_ref,          # SMEM scalar prefetch, [B] i32
                     adj_ref,                     # [N, N]        bf16
                     ego_ref,                     # [N, D_PAD]    f32
                     w1_ref, b1_ref,              # [2*D_PAD,H1], [1,H1] f32
                     w23_ref,                     # [H1, 1]       f32  (= w2@w3)
                     b23_ref,                     # [1]           f32  (SMEM scalar)
                     out_ref,                     # [B, 1]        f32
                     final_scr, x_scr):           # VMEM scratch
    # --- LightGCN propagation: E1 = A@E0, E2 = A@E1, final = mean(E0, E1, E2)
    a = adj_ref[...]                              # bf16 operands, f32 accumulation
    e0 = ego_ref[...]
    e1 = jnp.dot(a, e0.astype(jnp.bfloat16), preferred_element_type=jnp.float32)
    e2 = jnp.dot(a, e1.astype(jnp.bfloat16), preferred_element_type=jnp.float32)
    final_scr[...] = (e0 + e1 + e2) * jnp.float32(1.0 / 3.0)

    # --- fused gather + concat: x[b] = [final[user[b]], final[item[b] + n_users]]
    batch = x_scr.shape[0]
    for b in range(batch):                        # B is small & static -> unrolled
        u = uidx_ref[b]
        it = iidx_ref[b]                          # already offset by n_users
        x_scr[pl.ds(b, 1), pl.ds(0, D_PAD)] = final_scr[pl.ds(u, 1), :]
        x_scr[pl.ds(b, 1), pl.ds(D_PAD, D_PAD)] = final_scr[pl.ds(it, 1), :]

    # --- MLP head: relu(x @ W1 + b1) @ (W2 @ W3) + (b2 @ W3 + b3)
    x = x_scr[...]                                                        # [B, 256]
    h = jnp.dot(x, w1_ref[...], preferred_element_type=jnp.float32) + b1_ref[...]
    h = jnp.maximum(h, 0.0)                                               # ReLU
    p = jnp.dot(h, w23_ref[...], preferred_element_type=jnp.float32) + b23_ref[0]
    out_ref[...] = p                              # single store of the whole result


# ----------------------------------------------------------------------------
# Wrapper: padding / folding at trace time + one pallas_call.
# ----------------------------------------------------------------------------
def gcf_forward(params, adj, user_idx, item_idx, n_users):
    d = params["user_emb"].shape[1]

    # ego embeddings = concat(user_table, item_table), zero-padded to D_PAD lanes.
    ego = jnp.concatenate([params["user_emb"], params["item_emb"]], axis=0)
    ego = jnp.pad(ego, ((0, 0), (0, D_PAD - d))).astype(jnp.float32)      # [N, 128]
    n_total = ego.shape[0]

    # Pad W1 rows to match the padded + concatenated feature layout.
    w1 = params["w1"].astype(jnp.float32)                                 # [2d, H1]
    w1_pad = jnp.zeros((2 * D_PAD, H1), jnp.float32)
    w1_pad = w1_pad.at[:d, :].set(w1[:d, :])
    w1_pad = w1_pad.at[D_PAD:D_PAD + d, :].set(w1[d:, :])

    # Fold Linear2 / Linear3 (pure affine chain -> one matmul).
    w23 = (params["w2"] @ params["w3"]).astype(jnp.float32)               # [H1, 1]
    b23 = (params["b2"] @ params["w3"] + params["b3"]).reshape((1,)).astype(jnp.float32)

    adj_bf16 = adj.astype(jnp.bfloat16)           # halve HBM bytes for the A stream
    uidx = user_idx.astype(jnp.int32)
    iidx = (item_idx + n_users).astype(jnp.int32)
    batch = uidx.shape[0]

    idx2 = lambda i, u_ref, i_ref: (0, 0)         # every tensor is one whole block
    grid_spec = pltpu.PrefetchScalarGridSpec(
        num_scalar_prefetch=2,
        grid=(1,),
        in_specs=[
            pl.BlockSpec((n_total, n_total), idx2),              # adj (bf16)
            pl.BlockSpec((n_total, D_PAD), idx2),                # ego (f32, padded)
            pl.BlockSpec((2 * D_PAD, H1), idx2),                 # w1 (padded)
            pl.BlockSpec((1, H1), idx2),                         # b1
            pl.BlockSpec((H1, 1), idx2),                         # w2 @ w3
            pl.BlockSpec(memory_space=pltpu.MemorySpace.SMEM),   # b23 scalar
        ],
        out_specs=pl.BlockSpec((batch, 1), idx2),
        scratch_shapes=[
            pltpu.VMEM((n_total, D_PAD), jnp.float32),           # propagated embeddings
            pltpu.VMEM((batch, 2 * D_PAD), jnp.float32),         # gathered MLP input
        ],
    )
    out = pl.pallas_call(
        gcf_fused_kernel,
        out_shape=jax.ShapeDtypeStruct((batch, 1), jnp.float32),
        grid_spec=grid_spec,
        compiler_params=pltpu.CompilerParams(dimension_semantics=("arbitrary",)),
    )(uidx, iidx, adj_bf16, ego, w1_pad, params["b1"].astype(jnp.float32), w23, b23)
    return out.reshape(-1)                        # prediction = embd.flatten()


# ----------------------------------------------------------------------------
# Deterministic synthetic setup (mirrors GCF.__init__ / get_norm_adj_mat).
# ----------------------------------------------------------------------------
def build_norm_adj(n_users, n_items, interactions):
    """Dense A_hat = D^{-1/2} A D^{-1/2} from a list of (user, item) pairs."""
    n = n_users + n_items
    A = np.zeros((n, n), dtype=np.float32)
    for u, i in interactions:
        A[u, n_users + i] = 1.0
        A[n_users + i, u] = 1.0
    deg = (A > 0).sum(axis=1).astype(np.float32)
    d_inv_sqrt = np.power(np.maximum(deg, 1.0), -0.5)   # every node has >= 1 edge
    return (d_inv_sqrt[:, None] * A * d_inv_sqrt[None, :]).astype(np.float32)


if __name__ == "__main__":
    n_users, n_items, emb_size = 8, 16, 100
    batch = 8

    # Synthetic interaction data (every user and every item gets >= 1 edge).
    rng = np.random.RandomState(0)
    inter = set()
    for u in range(n_users):
        inter.add((u, u % n_items))
    for i in range(n_items):
        inter.add((i % n_users, i))
    for _ in range(40):
        inter.add((int(rng.randint(n_users)), int(rng.randint(n_items))))
    adj = jnp.asarray(build_norm_adj(n_users, n_items, sorted(inter)))

    # Deterministic parameter init (shapes from the module's __init__).
    key = jax.random.PRNGKey(0)
    ks = jax.random.split(key, 8)
    params = {
        "user_emb": jax.random.normal(ks[0], (n_users, emb_size), jnp.float32) * 0.1,
        "item_emb": jax.random.normal(ks[1], (n_items, emb_size), jnp.float32) * 0.1,
        "w1": jax.random.normal(ks[2], (2 * emb_size, 64), jnp.float32) * 0.05,   # Linear(200, 64)
        "b1": jax.random.normal(ks[3], (1, 64), jnp.float32) * 0.05,
        "w2": jax.random.normal(ks[4], (64, 32), jnp.float32) * 0.05,             # Linear(64, 32)
        "b2": jax.random.normal(ks[5], (1, 32), jnp.float32) * 0.05,
        "w3": jax.random.normal(ks[6], (32, 1), jnp.float32) * 0.05,              # Linear(32, 1)
        "b3": jax.random.normal(ks[7], (1, 1), jnp.float32) * 0.05,
    }

    user_idx = jnp.asarray(rng.randint(0, n_users, size=(batch,)), dtype=jnp.int32)
    item_idx = jnp.asarray(rng.randint(0, n_items, size=(batch,)), dtype=jnp.int32)

    pred = jax.jit(gcf_forward, static_argnums=(4,))(params, adj, user_idx, item_idx, n_users)
    pred = jax.block_until_ready(pred)

    # Pure-JAX f32 reference (semantics of the PyTorch module).
    ego = jnp.concatenate([params["user_emb"], params["item_emb"]], axis=0)
    e1 = adj @ ego
    e2 = adj @ e1
    final = (ego + e1 + e2) / 3.0
    x = jnp.concatenate([final[user_idx], final[item_idx + n_users]], axis=1)
    h = jnp.maximum(x @ params["w1"] + params["b1"], 0.0)
    h = h @ params["w2"] + params["b2"]
    ref = (h @ params["w3"] + params["b3"]).reshape(-1)

    assert pred.shape == (batch,)
    # Propagation matmuls run with bf16 operands (f32 accumulation), so the
    # comparison against the pure-f32 reference uses bf16-appropriate tolerances.
    np.testing.assert_allclose(np.asarray(pred), np.asarray(ref), rtol=2e-2, atol=2e-3)
    print("KERNEL_OK")
</pallas_src>

<mosaic_0001>
module attributes {stable_mosaic.version = 11 : i64} {
  func.func @gcf_fused_kernel(%arg0: i32, %arg1: memref<8xi32, #tpu.memory_space<smem>>, %arg2: memref<8xi32, #tpu.memory_space<smem>>, %arg3: memref<24x24xbf16, #tpu.memory_space<vmem>>, %arg4: memref<24x128xf32, #tpu.memory_space<vmem>>, %arg5: memref<256x64xf32, #tpu.memory_space<vmem>>, %arg6: memref<1x64xf32, #tpu.memory_space<vmem>>, %arg7: memref<64x1xf32, #tpu.memory_space<vmem>>, %arg8: memref<1xf32, #tpu.memory_space<smem>>, %arg9: memref<8x1xf32, #tpu.memory_space<vmem>>, %arg10: memref<24x128xf32, #tpu.memory_space<vmem>>, %arg11: memref<8x256xf32, #tpu.memory_space<vmem>>) attributes {dimension_semantics = [#tpu.dimension_semantics<arbitrary>], iteration_bounds = array<i64: 1>, scalar_prefetch = 2 : i64, scratch_operands = 2 : i64, tpu.core_type = #tpu.core_type<tc>, window_params = [{pipeline_mode = #tpu.pipeline_mode<synchronous>, transform_indices = @transform_0, window_bounds = array<i64: 24, 24>}, {pipeline_mode = #tpu.pipeline_mode<synchronous>, transform_indices = @transform_1, window_bounds = array<i64: 24, 128>}, {pipeline_mode = #tpu.pipeline_mode<synchronous>, transform_indices = @transform_2, window_bounds = array<i64: 256, 64>}, {pipeline_mode = #tpu.pipeline_mode<synchronous>, transform_indices = @transform_3, window_bounds = array<i64: 1, 64>}, {pipeline_mode = #tpu.pipeline_mode<synchronous>, transform_indices = @transform_4, window_bounds = array<i64: 64, 1>}, {transform_indices = @transform_5, window_bounds = array<i64: 1>}, {pipeline_mode = #tpu.pipeline_mode<synchronous>, transform_indices = @transform_6, window_bounds = array<i64: 8, 1>}]} {
    %c0 = arith.constant 0 : index
    %c0_0 = arith.constant 0 : index
    %0 = vector.load %arg3[%c0, %c0_0] : memref<24x24xbf16, #tpu.memory_space<vmem>>, vector<24x24xbf16>
    %c0_1 = arith.constant 0 : index
    %c0_2 = arith.constant 0 : index
    %1 = vector.load %arg4[%c0_1, %c0_2] : memref<24x128xf32, #tpu.memory_space<vmem>>, vector<24x128xf32>
    %2 = arith.truncf %1 : vector<24x128xf32> to vector<24x128xbf16>
    %cst = arith.constant dense<0.000000e+00> : vector<24x128xf32>
    %3 = tpu.matmul %0, %2, %cst {dimension_numbers = #tpu.dot_dimension_numbers<[1], [0], [0], [1], [0, 0, 1, 1], [], []>} : vector<24x24xbf16>, vector<24x128xbf16>, vector<24x128xf32> -> vector<24x128xf32>
    %4 = arith.truncf %3 : vector<24x128xf32> to vector<24x128xbf16>
    %cst_3 = arith.constant dense<0.000000e+00> : vector<24x128xf32>
    %5 = tpu.matmul %0, %4, %cst_3 {dimension_numbers = #tpu.dot_dimension_numbers<[1], [0], [0], [1], [0, 0, 1, 1], [], []>} : vector<24x24xbf16>, vector<24x128xbf16>, vector<24x128xf32> -> vector<24x128xf32>
    %6 = arith.addf %1, %3 : vector<24x128xf32>
    %7 = arith.addf %6, %5 : vector<24x128xf32>
    %cst_4 = arith.constant 0.333333343 : f32
    %8 = vector.broadcast %cst_4 : f32 to vector<24x128xf32>
    %9 = arith.mulf %7, %8 : vector<24x128xf32>
    %c0_5 = arith.constant 0 : index
    %c0_6 = arith.constant 0 : index
    %10 = vector.load %arg10[%c0_5, %c0_6] : memref<24x128xf32, #tpu.memory_space<vmem>>, vector<24x128xf32>
    tpu.vector_store %arg10[%c0_5, %c0_6], %9 {strides = array<i32>} : memref<24x128xf32, #tpu.memory_space<vmem>>, vector<24x128xf32>,
    %c0_7 = arith.constant 0 : index
    %11 = memref.load %arg1[%c0_7] : memref<8xi32, #tpu.memory_space<smem>>
    %c0_8 = arith.constant 0 : index
    %12 = memref.load %arg2[%c0_8] : memref<8xi32, #tpu.memory_space<smem>>
    %13 = arith.index_cast %11 : i32 to index
    %c0_9 = arith.constant 0 : index
    %14 = vector.load %arg10[%13, %c0_9] : memref<24x128xf32, #tpu.memory_space<vmem>>, vector<1x128xf32>
    %c0_10 = arith.constant 0 : index
    %c0_11 = arith.constant 0 : index
    %15 = vector.load %arg11[%c0_10, %c0_11] : memref<8x256xf32, #tpu.memory_space<vmem>>, vector<1x128xf32>
    tpu.vector_store %arg11[%c0_10, %c0_11], %14 {strides = array<i32>} : memref<8x256xf32, #tpu.memory_space<vmem>>, vector<1x128xf32>,
    %16 = arith.index_cast %12 : i32 to index
    %c0_12 = arith.constant 0 : index
    %17 = vector.load %arg10[%16, %c0_12] : memref<24x128xf32, #tpu.memory_space<vmem>>, vector<1x128xf32>
    %c0_13 = arith.constant 0 : index
    %c128 = arith.constant 128 : index
    %18 = vector.load %arg11[%c0_13, %c128] : memref<8x256xf32, #tpu.memory_space<vmem>>, vector<1x128xf32>
    tpu.vector_store %arg11[%c0_13, %c128], %17 {strides = array<i32>} : memref<8x256xf32, #tpu.memory_space<vmem>>, vector<1x128xf32>,
    %c1 = arith.constant 1 : index
    %19 = memref.load %arg1[%c1] : memref<8xi32, #tpu.memory_space<smem>>
    %c1_14 = arith.constant 1 : index
    %20 = memref.load %arg2[%c1_14] : memref<8xi32, #tpu.memory_space<smem>>
    %21 = arith.index_cast %19 : i32 to index
    %c0_15 = arith.constant 0 : index
    %22 = vector.load %arg10[%21, %c0_15] : memref<24x128xf32, #tpu.memory_space<vmem>>, vector<1x128xf32>
    %c1_16 = arith.constant 1 : index
    %c0_17 = arith.constant 0 : index
    %23 = vector.load %arg11[%c1_16, %c0_17] : memref<8x256xf32, #tpu.memory_space<vmem>>, vector<1x128xf32>
    tpu.vector_store %arg11[%c1_16, %c0_17], %22 {strides = array<i32>} : memref<8x256xf32, #tpu.memory_space<vmem>>, vector<1x128xf32>,
    %24 = arith.index_cast %20 : i32 to index
    %c0_18 = arith.constant 0 : index
    %25 = vector.load %arg10[%24, %c0_18] : memref<24x128xf32, #tpu.memory_space<vmem>>, vector<1x128xf32>
    %c1_19 = arith.constant 1 : index
    %c128_20 = arith.constant 128 : index
    %26 = vector.load %arg11[%c1_19, %c128_20] : memref<8x256xf32, #tpu.memory_space<vmem>>, vector<1x128xf32>
    tpu.vector_store %arg11[%c1_19, %c128_20], %25 {strides = array<i32>} : memref<8x256xf32, #tpu.memory_space<vmem>>, vector<1x128xf32>,
    %c2 = arith.constant 2 : index
    %27 = memref.load %arg1[%c2] : memref<8xi32, #tpu.memory_space<smem>>
    %c2_21 = arith.constant 2 : index
    %28 = memref.load %arg2[%c2_21] : memref<8xi32, #tpu.memory_space<smem>>
    %29 = arith.index_cast %27 : i32 to index
    %c0_22 = arith.constant 0 : index
    %30 = vector.load %arg10[%29, %c0_22] : memref<24x128xf32, #tpu.memory_space<vmem>>, vector<1x128xf32>
    %c2_23 = arith.constant 2 : index
    %c0_24 = arith.constant 0 : index
    %31 = vector.load %arg11[%c2_23, %c0_24] : memref<8x256xf32, #tpu.memory_space<vmem>>, vector<1x128xf32>
    tpu.vector_store %arg11[%c2_23, %c0_24], %30 {strides = array<i32>} : memref<8x256xf32, #tpu.memory_space<vmem>>, vector<1x128xf32>,
    %32 = arith.index_cast %28 : i32 to index
    %c0_25 = arith.constant 0 : index
    %33 = vector.load %arg10[%32, %c0_25] : memref<24x128xf32, #tpu.memory_space<vmem>>, vector<1x128xf32>
    %c2_26 = arith.constant 2 : index
    %c128_27 = arith.constant 128 : index
    %34 = vector.load %arg11[%c2_26, %c128_27] : memref<8x256xf32, #tpu.memory_space<vmem>>, vector<1x128xf32>
    tpu.vector_store %arg11[%c2_26, %c128_27], %33 {strides = array<i32>} : memref<8x256xf32, #tpu.memory_space<vmem>>, vector<1x128xf32>,
    %c3 = arith.constant 3 : index
    %35 = memref.load %arg1[%c3] : memref<8xi32, #tpu.memory_space<smem>>
    %c3_28 = arith.constant 3 : index
    %36 = memref.load %arg2[%c3_28] : memref<8xi32, #tpu.memory_space<smem>>
    %37 = arith.index_cast %35 : i32 to index
    %c0_29 = arith.constant 0 : index
    %38 = vector.load %arg10[%37, %c0_29] : memref<24x128xf32, #tpu.memory_space<vmem>>, vector<1x128xf32>
    %c3_30 = arith.constant 3 : index
    %c0_31 = arith.constant 0 : index
    %39 = vector.load %arg11[%c3_30, %c0_31] : memref<8x256xf32, #tpu.memory_space<vmem>>, vector<1x128xf32>
    tpu.vector_store %arg11[%c3_30, %c0_31], %38 {strides = array<i32>} : memref<8x256xf32, #tpu.memory_space<vmem>>, vector<1x128xf32>,
    %40 = arith.index_cast %36 : i32 to index
    %c0_32 = arith.constant 0 : index
    %41 = vector.load %arg10[%40, %c0_32] : memref<24x128xf32, #tpu.memory_space<vmem>>, vector<1x128xf32>
    %c3_33 = arith.constant 3 : index
    %c128_34 = arith.constant 128 : index
    %42 = vector.load %arg11[%c3_33, %c128_34] : memref<8x256xf32, #tpu.memory_space<vmem>>, vector<1x128xf32>
    tpu.vector_store %arg11[%c3_33, %c128_34], %41 {strides = array<i32>} : memref<8x256xf32, #tpu.memory_space<vmem>>, vector<1x128xf32>,
    %c4 = arith.constant 4 : index
    %43 = memref.load %arg1[%c4] : memref<8xi32, #tpu.memory_space<smem>>
    %c4_35 = arith.constant 4 : index
    %44 = memref.load %arg2[%c4_35] : memref<8xi32, #tpu.memory_space<smem>>
    %45 = arith.index_cast %43 : i32 to index
    %c0_36 = arith.constant 0 : index
    %46 = vector.load %arg10[%45, %c0_36] : memref<24x128xf32, #tpu.memory_space<vmem>>, vector<1x128xf32>
    %c4_37 = arith.constant 4 : index
    %c0_38 = arith.constant 0 : index
    %47 = vector.load %arg11[%c4_37, %c0_38] : memref<8x256xf32, #tpu.memory_space<vmem>>, vector<1x128xf32>
    tpu.vector_store %arg11[%c4_37, %c0_38], %46 {strides = array<i32>} : memref<8x256xf32, #tpu.memory_space<vmem>>, vector<1x128xf32>,
    %48 = arith.index_cast %44 : i32 to index
    %c0_39 = arith.constant 0 : index
    %49 = vector.load %arg10[%48, %c0_39] : memref<24x128xf32, #tpu.memory_space<vmem>>, vector<1x128xf32>
    %c4_40 = arith.constant 4 : index
    %c128_41 = arith.constant 128 : index
    %50 = vector.load %arg11[%c4_40, %c128_41] : memref<8x256xf32, #tpu.memory_space<vmem>>, vector<1x128xf32>
    tpu.vector_store %arg11[%c4_40, %c128_41], %49 {strides = array<i32>} : memref<8x256xf32, #tpu.memory_space<vmem>>, vector<1x128xf32>,
    %c5 = arith.constant 5 : index
    %51 = memref.load %arg1[%c5] : memref<8xi32, #tpu.memory_space<smem>>
    %c5_42 = arith.constant 5 : index
    %52 = memref.load %arg2[%c5_42] : memref<8xi32, #tpu.memory_space<smem>>
    %53 = arith.index_cast %51 : i32 to index
    %c0_43 = arith.constant 0 : index
    %54 = vector.load %arg10[%53, %c0_43] : memref<24x128xf32, #tpu.memory_space<vmem>>, vector<1x128xf32>
    %c5_44 = arith.constant 5 : index
    %c0_45 = arith.constant 0 : index
    %55 = vector.load %arg11[%c5_44, %c0_45] : memref<8x256xf32, #tpu.memory_space<vmem>>, vector<1x128xf32>
    tpu.vector_store %arg11[%c5_44, %c0_45], %54 {strides = array<i32>} : memref<8x256xf32, #tpu.memory_space<vmem>>, vector<1x128xf32>,
    %56 = arith.index_cast %52 : i32 to index
    %c0_46 = arith.constant 0 : index
    %57 = vector.load %arg10[%56, %c0_46] : memref<24x128xf32, #tpu.memory_space<vmem>>, vector<1x128xf32>
    %c5_47 = arith.constant 5 : index
    %c128_48 = arith.constant 128 : index
    %58 = vector.load %arg11[%c5_47, %c128_48] : memref<8x256xf32, #tpu.memory_space<vmem>>, vector<1x128xf32>
    tpu.vector_store %arg11[%c5_47, %c128_48], %57 {strides = array<i32>} : memref<8x256xf32, #tpu.memory_space<vmem>>, vector<1x128xf32>,
    %c6 = arith.constant 6 : index
    %59 = memref.load %arg1[%c6] : memref<8xi32, #tpu.memory_space<smem>>
    %c6_49 = arith.constant 6 : index
    %60 = memref.load %arg2[%c6_49] : memref<8xi32, #tpu.memory_space<smem>>
    %61 = arith.index_cast %59 : i32 to index
    %c0_50 = arith.constant 0 : index
    %62 = vector.load %arg10[%61, %c0_50] : memref<24x128xf32, #tpu.memory_space<vmem>>, vector<1x128xf32>
    %c6_51 = arith.constant 6 : index
    %c0_52 = arith.constant 0 : index
    %63 = vector.load %arg11[%c6_51, %c0_52] : memref<8x256xf32, #tpu.memory_space<vmem>>, vector<1x128xf32>
    tpu.vector_store %arg11[%c6_51, %c0_52], %62 {strides = array<i32>} : memref<8x256xf32, #tpu.memory_space<vmem>>, vector<1x128xf32>,
    %64 = arith.index_cast %60 : i32 to index
    %c0_53 = arith.constant 0 : index
    %65 = vector.load %arg10[%64, %c0_53] : memref<24x128xf32, #tpu.memory_space<vmem>>, vector<1x128xf32>
    %c6_54 = arith.constant 6 : index
    %c128_55 = arith.constant 128 : index
    %66 = vector.load %arg11[%c6_54, %c128_55] : memref<8x256xf32, #tpu.memory_space<vmem>>, vector<1x128xf32>
    tpu.vector_store %arg11[%c6_54, %c128_55], %65 {strides = array<i32>} : memref<8x256xf32, #tpu.memory_space<vmem>>, vector<1x128xf32>,
    %c7 = arith.constant 7 : index
    %67 = memref.load %arg1[%c7] : memref<8xi32, #tpu.memory_space<smem>>
    %c7_56 = arith.constant 7 : index
    %68 = memref.load %arg2[%c7_56] : memref<8xi32, #tpu.memory_space<smem>>
    %69 = arith.index_cast %67 : i32 to index
    %c0_57 = arith.constant 0 : index
    %70 = vector.load %arg10[%69, %c0_57] : memref<24x128xf32, #tpu.memory_space<vmem>>, vector<1x128xf32>
    %c7_58 = arith.constant 7 : index
    %c0_59 = arith.constant 0 : index
    %71 = vector.load %arg11[%c7_58, %c0_59] : memref<8x256xf32, #tpu.memory_space<vmem>>, vector<1x128xf32>
    tpu.vector_store %arg11[%c7_58, %c0_59], %70 {strides = array<i32>} : memref<8x256xf32, #tpu.memory_space<vmem>>, vector<1x128xf32>,
    %72 = arith.index_cast %68 : i32 to index
    %c0_60 = arith.constant 0 : index
    %73 = vector.load %arg10[%72, %c0_60] : memref<24x128xf32, #tpu.memory_space<vmem>>, vector<1x128xf32>
    %c7_61 = arith.constant 7 : index
    %c128_62 = arith.constant 128 : index
    %74 = vector.load %arg11[%c7_61, %c128_62] : memref<8x256xf32, #tpu.memory_space<vmem>>, vector<1x128xf32>
    tpu.vector_store %arg11[%c7_61, %c128_62], %73 {strides = array<i32>} : memref<8x256xf32, #tpu.memory_space<vmem>>, vector<1x128xf32>,
    %c0_63 = arith.constant 0 : index
    %c0_64 = arith.constant 0 : index
    %75 = vector.load %arg11[%c0_63, %c0_64] : memref<8x256xf32, #tpu.memory_space<vmem>>, vector<8x256xf32>
    %c0_65 = arith.constant 0 : index
    %c0_66 = arith.constant 0 : index
    %76 = vector.load %arg5[%c0_65, %c0_66] : memref<256x64xf32, #tpu.memory_space<vmem>>, vector<256x64xf32>
    %cst_67 = arith.constant dense<0.000000e+00> : vector<8x64xf32>
    %77 = tpu.matmul %75, %76, %cst_67 {dimension_numbers = #tpu.dot_dimension_numbers<[1], [0], [0], [1], [0, 0, 1, 1], [], []>} : vector<8x256xf32>, vector<256x64xf32>, vector<8x64xf32> -> vector<8x64xf32>
    %c0_68 = arith.constant 0 : index
    %c0_69 = arith.constant 0 : index
    %78 = vector.load %arg6[%c0_68, %c0_69] : memref<1x64xf32, #tpu.memory_space<vmem>>, vector<1x64xf32>
    %79 = vector.broadcast %78 : vector<1x64xf32> to vector<8x64xf32>
    %80 = arith.addf %77, %79 : vector<8x64xf32>
    %cst_70 = arith.constant 0.000000e+00 : f32
    %81 = vector.broadcast %cst_70 : f32 to vector<8x64xf32>
    %82 = arith.maximumf %80, %81 : vector<8x64xf32>
    %c0_71 = arith.constant 0 : index
    %c0_72 = arith.constant 0 : index
    %83 = vector.load %arg7[%c0_71, %c0_72] : memref<64x1xf32, #tpu.memory_space<vmem>>, vector<64x1xf32>
    %cst_73 = arith.constant dense<0.000000e+00> : vector<8x1xf32>
    %84 = tpu.matmul %82, %83, %cst_73 {dimension_numbers = #tpu.dot_dimension_numbers<[1], [0], [0], [1], [0, 0, 1, 1], [], []>} : vector<8x64xf32>, vector<64x1xf32>, vector<8x1xf32> -> vector<8x1xf32>
    %c0_74 = arith.constant 0 : index
    %85 = memref.load %arg8[%c0_74] : memref<1xf32, #tpu.memory_space<smem>>
    %86 = vector.broadcast %85 : f32 to vector<8x1xf32>
    %87 = arith.addf %84, %86 : vector<8x1xf32>
    %c0_75 = arith.constant 0 : index
    %c0_76 = arith.constant 0 : index
    %88 = vector.load %arg9[%c0_75, %c0_76] : memref<8x1xf32, #tpu.memory_space<vmem>>, vector<8x1xf32>
    tpu.vector_store %arg9[%c0_75, %c0_76], %87 {strides = array<i32>} : memref<8x1xf32, #tpu.memory_space<vmem>>, vector<8x1xf32>,
    return
  }
  func.func @transform_0(%arg0: i32, %arg1: memref<8xi32, #tpu.memory_space<smem>>, %arg2: memref<8xi32, #tpu.memory_space<smem>>) -> (i32, i32) {
    %c0_i32 = arith.constant 0 : i32
    %c0_i32_0 = arith.constant 0 : i32
    %c0_i32_1 = arith.constant 0 : i32
    return %c0_i32, %c0_i32_0 : i32, i32
  }
  func.func @transform_1(%arg0: i32, %arg1: memref<8xi32, #tpu.memory_space<smem>>, %arg2: memref<8xi32, #tpu.memory_space<smem>>) -> (i32, i32) {
    %c0_i32 = arith.constant 0 : i32
    %c0_i32_0 = arith.constant 0 : i32
    %c0_i32_1 = arith.constant 0 : i32
    return %c0_i32, %c0_i32_0 : i32, i32
  }
  func.func @transform_2(%arg0: i32, %arg1: memref<8xi32, #tpu.memory_space<smem>>, %arg2: memref<8xi32, #tpu.memory_space<smem>>) -> (i32, i32) {
    %c0_i32 = arith.constant 0 : i32
    %c0_i32_0 = arith.constant 0 : i32
    %c0_i32_1 = arith.constant 0 : i32
    return %c0_i32, %c0_i32_0 : i32, i32
  }
  func.func @transform_3(%arg0: i32, %arg1: memref<8xi32, #tpu.memory_space<smem>>, %arg2: memref<8xi32, #tpu.memory_space<smem>>) -> (i32, i32) {
    %c0_i32 = arith.constant 0 : i32
    %c0_i32_0 = arith.constant 0 : i32
    %c0_i32_1 = arith.constant 0 : i32
    return %c0_i32, %c0_i32_0 : i32, i32
  }
  func.func @transform_4(%arg0: i32, %arg1: memref<8xi32, #tpu.memory_space<smem>>, %arg2: memref<8xi32, #tpu.memory_space<smem>>) -> (i32, i32) {
    %c0_i32 = arith.constant 0 : i32
    %c0_i32_0 = arith.constant 0 : i32
    %c0_i32_1 = arith.constant 0 : i32
    return %c0_i32, %c0_i32_0 : i32, i32
  }
  func.func @transform_5(%arg0: i32, %arg1: memref<8xi32, #tpu.memory_space<smem>>, %arg2: memref<8xi32, #tpu.memory_space<smem>>) -> i32 {
    %c0_i32 = arith.constant 0 : i32
    %c0_i32_0 = arith.constant 0 : i32
    return %c0_i32 : i32
  }
  func.func @transform_6(%arg0: i32, %arg1: memref<8xi32, #tpu.memory_space<smem>>, %arg2: memref<8xi32, #tpu.memory_space<smem>>) -> (i32, i32) {
    %c0_i32 = arith.constant 0 : i32
    %c0_i32_0 = arith.constant 0 : i32
    %c0_i32_1 = arith.constant 0 : i32
    return %c0_i32, %c0_i32_0 : i32, i32
  }
}

</mosaic_0001>

<bundles_post_ra>
// kernel: gcf_forward.1
= control target key start
LH: loop header
LB: loop body
LE: loop exit
PB: predicated region body
PF: predicated region fallthrough
CT: control target
= control target key end

     0   :  { %s933_s0 = inlined_call_operand.vmem [shape: s32[8], index: 0, kind: input, shape index: {}]   ;;  %s934_s2 = inlined_call_operand.vmem [shape: bf16[24,24], index: 2, kind: input, shape index: {}]   ;;  %s935_s3 = inlined_call_operand.vmem [shape: f32[24,128], index: 3, kind: input, shape index: {}]   ;;  %s936_s4 = inlined_call_operand.vmem [shape: f32[256,64], index: 4, kind: input, shape index: {}]   ;;  %s937_s5 = inlined_call_operand.vmem [shape: f32[1,64], index: 5, kind: input, shape index: {}]   ;;  %s938_s6 = inlined_call_operand.vmem [shape: f32[64,1], index: 6, kind: input, shape index: {}]   ;;  %s939_s7 = inlined_call_operand.<no memory space> [shape: f32[1], index: 7, kind: input, shape index: {}]   ;;  %s940_s8 = inlined_call_operand.vmem [shape: f32[8,1], index: 8, kind: output, shape index: {}]   ;;  %s941_s1 = inlined_call_operand.vmem [shape: s32[8], index: 1, kind: input, shape index: {}]  }
   0x1   :  { %s13_s29 = sshll.u32 %s933_s0, 4  ;;  %s17_s10 = sshll.u32 %s941_s1, 4  ;;  %s14_s29 = int_to_ptr.vmem [resolvable:$true] %s13_s29  ;;  %s18_s10 = int_to_ptr.vmem [resolvable:$true] %s17_s10 }
   0x2   :  { %s621_s11 = scalar_lea.vmem %s14_s29, 16  ;;  %p626_p1 = scmp.lt.s32.totalorder %s14_s29, %s14_s29 }
   0x3   :  { %p622_p0 = scmp.ne.s32.totalorder %s14_s29, %s621_s11  ;;  %p627_p2 = scmp.lt.s32.totalorder %s621_s11, %s621_s11 }
   0x5   :  { %p628_p3 = por %p627_p2, %p626_p1 }
   0x7   :  { %p629_p4 = pnand %p628_p3, %p622_p0 }
   0x9   :  { %632 = shalt.err (!%p629_p4)  }
   0xa   :  { %s647_s12 = smov [#allocation5]   ;;  %s633_s13 = scalar_lea.vmem %s18_s10, 16 }
   0xb   :  { %16 = dma.vmem_to_smem %s14_s29, 16, %s647_s12, [#allocation4] }
   0xc   :  { %p634_p5 = scmp.ne.s32.totalorder %s18_s10, %s633_s13  ;;  %p638_p6 = scmp.lt.s32.totalorder %s18_s10, %s18_s10 }
   0xd   :  { %p639_p7 = scmp.lt.s32.totalorder %s633_s13, %s633_s13 }
   0xf   :  { %p640_p8 = por %p639_p7, %p638_p6 }
  0x11   :  { %p641_p9 = pnand %p640_p8, %p634_p5 }
  0x13   :  { %644 = shalt.err (!%p641_p9)  }
  0x14   :  { %s648_s0 = smov [#allocation6]  }
  0x15   :  { %20 = dma.vmem_to_smem %s18_s10, 16, %s648_s0, [#allocation4] }
  0x16   :  { %645 = dma.done.wait [#allocation4], 32 }
  0x17   :  { %646 = vsyncadd [#allocation4], 4294967264 }
  0x18   :  { %23 = sfence }
  0x19   :  { %v706_v0 = vld [vmem:[%s935_s3] sm:$0xff]  ;;  %v711_v1 = vld [vmem:[%s935_s3 + $0x8] sm:$0xff]  ;;  %v716_v2 = vld [vmem:[%s935_s3 + $0x10] sm:$0xff]  ;;  %vm53_vm0 = vcmask 195584   ;;  %vm60_vm1 = vcmask 1043456   ;;  %s857_s16 = sld [smem:[#allocation5]] }
  0x1a   :  { %v43_v3 = vpack.c.bf16 %v711_v1, %v706_v0  ;;  %v44_v4 = vpack.c.bf16 %v716_v2, %v716_v2  ;;  %v619_v5 = vld [vmem:[%s934_s2] sm:$0xff]   ;;  %v620_v7 = vld [vmem:[%s934_s2 + $0x8] ss:$0 sps:$4 sm:$0xff]   ;;  %v261_v13 = vld [vmem:[%s936_s4 + $0x90] sm:$0xff]  ;;  %s861_s17 = sld [smem:[#allocation5 + $0x1]]  ;;  %s863_s18 = sld [smem:[#allocation5 + $0x2]] }
  0x1b   :  { %537 = vmatprep.mubr.msk.bf16.mxu1 %vm53_vm0, %v619_v5  ;;  %v259_v8 = vld [vmem:[%s936_s4 + $0x80] sm:$0xff]  ;;  %v260_v9 = vld [vmem:[%s936_s4 + $0x88] sm:$0xff]  ;;  %v262_v14 = vld [vmem:[%s936_s4 + $0x98] sm:$0xff]  ;;  %s867_s19 = sld [smem:[#allocation5 + $0x3]]  ;;  %s869_s20 = sld [smem:[#allocation5 + $0x4]]  ;;  %vm650_vm2 = vmmov 0  }
  0x1c   :  { %533 = vmatprep.subr.bf16.mxu1 %v43_v3  ;;  %v62_v6 = vsel %vm60_vm1, %v44_v4, 0  ;;  %v243_v10 = vld [vmem:[%s936_s4] sm:$0xff]  ;;  %v568_v11 = vpack.c.bf16 %v260_v9, %v259_v8  ;;  %v244_v12 = vld [vmem:[%s936_s4 + $0x8] sm:$0xff]  ;;  %v572_v16 = vpack.c.bf16 %v262_v14, %v261_v13  ;;  %v245_v17 = vld [vmem:[%s936_s4 + $0x10] sm:$0xff]  ;;  %s871_s3 = sld [smem:[#allocation5 + $0x5]]  ;;  %s873_s21 = sld [smem:[#allocation5 + $0x6]] }
  0x1d   :  { %534 = vmatpush3.bf16.msra.mxu1 %v43_v3  ;;  %v570_v15 = vpack.c.bf16 %v244_v12, %v243_v10  ;;  %v246_v18 = vld [vmem:[%s936_s4 + $0x18] sm:$0xff]  ;;  %v263_v27 = vld [vmem:[%s936_s4 + $0xa0] sm:$0xff]  ;;  %v264_v28 = vld [vmem:[%s936_s4 + $0xa8] sm:$0xff]  ;;  %s877_s22 = sld [smem:[#allocation5 + $0x7]]  ;;  %s879_s23 = sld [smem:[#allocation6]]  ;;  %vm363_vm3 = vcmask 523264  }
  0x1e   :  { %612 = vmatprep.subr.msk.bf16.mxu1 %vm60_vm1, %v44_v4  ;;  %569 = vmatprep.subr.bf16.mxu0 %v568_v11  ;;  %v574_v19 = vpack.c.bf16 %v246_v18, %v245_v17  ;;  %v576_v29 = vpack.c.bf16 %v264_v28, %v263_v27  ;;  %v247_v30 = vld [vmem:[%s936_s4 + $0x20] sm:$0xff]  ;;  %v248_v31 = vld [vmem:[%s936_s4 + $0x28] sm:$0xff]  ;;  %v265_v33 = vld [vmem:[%s936_s4 + $0xb0] sm:$0xff]  ;;  %s881_s24 = sld [smem:[#allocation6 + $0x1]]  ;;  %s883_s25 = sld [smem:[#allocation6 + $0x2]]  ;;  %vm437_vm4 = vcmask 7168  }
  0x1f   :  { %571 = vmatpush3.bf16.msra.mxu0 %v570_v15  ;;  %v578_v32 = vpack.c.bf16 %v248_v31, %v247_v30  ;;  %v266_v34 = vld [vmem:[%s936_s4 + $0xb8] sm:$0xff]  ;;  %v249_v36 = vld [vmem:[%s936_s4 + $0x30] sm:$0xff]  ;;  %v267_v39 = vld [vmem:[%s936_s4 + $0xc0] sm:$0xff]  ;;  %s885_s26 = sld [smem:[#allocation6 + $0x3]]  ;;  %s887_s27 = sld [smem:[#allocation6 + $0x4]] }
  0x20   :  { %573 = vmatprep.subr.bf16.mxu0 %v572_v16  ;;  %v580_v35 = vpack.c.bf16 %v266_v34, %v265_v33  ;;  %v250_v37 = vld [vmem:[%s936_s4 + $0x38] sm:$0xff]  ;;  %v268_v40 = vld [vmem:[%s936_s4 + $0xc8] sm:$0xff]  ;;  %v251_v42 = vld [vmem:[%s936_s4 + $0x40] sm:$0xff]  ;;  %s889_s28 = sld [smem:[#allocation6 + $0x5]]  ;;  %s891_s2 = sld [smem:[#allocation6 + $0x6]] }
  0x21   :  { %536 = vmatpush3.bf16.msra.mxu1 %v62_v6  ;;  %v582_v38 = vpack.c.bf16 %v250_v37, %v249_v36  ;;  %v584_v41 = vpack.c.bf16 %v268_v40, %v267_v39  ;;  %v252_v43 = vld [vmem:[%s936_s4 + $0x48] sm:$0xff]  ;;  %v269_v45 = vld [vmem:[%s936_s4 + $0xd0] sm:$0xff]  ;;  %v270_v46 = vld [vmem:[%s936_s4 + $0xd8] sm:$0xff]  ;;  %s893_s29 = sld [smem:[#allocation6 + $0x7]]  ;;  %s179_s30 = scalar_lea.vmem [#allocation2], %s857_s16 }
  0x22   :  { %v586_v44 = vpack.c.bf16 %v252_v43, %v251_v42  ;;  %v588_v47 = vpack.c.bf16 %v270_v46, %v269_v45  ;;  %v253_v48 = vld [vmem:[%s936_s4 + $0x50] sm:$0xff]  ;;  %v254_v49 = vld [vmem:[%s936_s4 + $0x58] sm:$0xff]  ;;  %v271_v51 = vld [vmem:[%s936_s4 + $0xe0] sm:$0xff]  ;;  %s187_s9 = scalar_lea.vmem [#allocation2], %s861_s17  ;;  %s195_s10 = scalar_lea.vmem [#allocation2], %s863_s18  ;;  %v651_v43 = vmov 0.0  }
  0x23   :  { %575 = vmatpush3.bf16.msra.mxu0 %v574_v19  ;;  %v590_v50 = vpack.c.bf16 %v254_v49, %v253_v48  ;;  %v272_v52 = vld [vmem:[%s936_s4 + $0xe8] sm:$0xff]  ;;  %v255_v54 = vld [vmem:[%s936_s4 + $0x60] sm:$0xff]  ;;  %v273_v57 = vld [vmem:[%s936_s4 + $0xf0] sm:$0xff]  ;;  %s203_s11 = scalar_lea.vmem [#allocation2], %s867_s19  ;;  %s211_s12 = scalar_lea.vmem [#allocation2], %s869_s20 }
  0x24   :  { %538 = vmatmul.mubr.msk.bf16.vlgmr.msra.gmra.mrb[0].mxu1 %vm53_vm0, %v620_v7  ;;  %577 = vmatprep.subr.bf16.mxu0 %v576_v29  ;;  %v592_v53 = vpack.c.bf16 %v272_v52, %v271_v51  ;;  %v256_v55 = vld [vmem:[%s936_s4 + $0x68] sm:$0xff]  ;;  %v274_v58 = vld [vmem:[%s936_s4 + $0xf8] sm:$0xff]  ;;  %v257_v59 = vld [vmem:[%s936_s4 + $0x70] sm:$0xff]  ;;  %s219_s13 = scalar_lea.vmem [#allocation2], %s871_s3  ;;  %s227_s0 = scalar_lea.vmem [#allocation2], %s873_s21 }
  0x25   :  { %545 = vmatprep.mubr.msk.bf16.mxu1 %vm53_vm0, %v619_v5  ;;  %v594_v56 = vpack.c.bf16 %v256_v55, %v255_v54  ;;  %v596_v60 = vpack.c.bf16 %v274_v58, %v273_v57  ;;  %v258_v61 = vld [vmem:[%s936_s4 + $0x78] sm:$0xff]  ;;  %v353_v63 = vld [vmem:[%s938_s6] sm:$0xff]  ;;  %v354_v3 = vld [vmem:[%s938_s6 + $0x8] sm:$0xff]  ;;  %v649_v5 = vmov 0.0|0.0   ;;  %s235_s1 = scalar_lea.vmem [#allocation2], %s877_s22  ;;  %s182_s14 = scalar_lea.vmem [#allocation2], %s879_s23 }
  0x26   :  { %v598_v62 = vpack.c.bf16 %v258_v61, %v257_v59  ;;  %v355_v4 = vld [vmem:[%s938_s6 + $0x10] sm:$0xff]  ;;  %v601_v6 = vpack.c.bf16 %v354_v3, %v353_v63  ;;  %s190_s4 = scalar_lea.vmem [#allocation2], %s881_s24  ;;  %s198_s15 = scalar_lea.vmem [#allocation2], %s883_s25  ;;  %v357_v37 = vld [vmem:[%s938_s6 + $0x20] sm:$0xff] }
  0x27   :  { %579 = vmatpush3.bf16.msra.mxu0 %v578_v32  ;;  %s206_s16 = scalar_lea.vmem [#allocation2], %s885_s26  ;;  %s214_s17 = scalar_lea.vmem [#allocation2], %s887_s27  ;;  %v359_v40 = vld [vmem:[%s938_s6 + $0x30] sm:$0xff]  ;;  %v479_v45 = vld [vmem:[%s937_s5] ss:$0 sm:$0xff] }
  0x28   :  { %581 = vmatprep.subr.bf16.mxu0 %v580_v35  ;;  %s222_s18 = scalar_lea.vmem [#allocation2], %s889_s28  ;;  %s230_s19 = scalar_lea.vmem [#allocation2], %s891_s2 }
  0x29   :  { %s238_s20 = scalar_lea.vmem [#allocation2], %s893_s29 }
  0x2b   :  { %583 = vmatpush3.bf16.msra.mxu0 %v582_v38  ;;  %v358_v38 = vld [vmem:[%s938_s6 + $0x28] sm:$0xff] }
  0x2c   :  { %585 = vmatprep.subr.bf16.mxu0 %v584_v41  ;;  %v607_v39 = vpack.c.bf16 %v358_v38, %v357_v37  ;;  %v360_v41 = vld [vmem:[%s938_s6 + $0x38] sm:$0xff] }
  0x2d   :  { %v610_v42 = vpack.c.bf16 %v360_v41, %v359_v40 }
  0x2f   :  { %587 = vmatpush3.bf16.msra.mxu0 %v586_v44 }
  0x30   :  { %589 = vmatprep.subr.bf16.mxu0 %v588_v47 }
  0x33   :  { %591 = vmatpush3.bf16.msra.mxu0 %v590_v50  ;;  %v362_v50 = vstv %s939_s7 }
  0x34   :  { %593 = vmatprep.subr.bf16.mxu0 %v592_v53 }
  0x37   :  { %595 = vmatpush3.bf16.msra.mxu0 %v594_v56 }
  0x38   :  { %597 = vmatprep.subr.bf16.mxu0 %v596_v60 }
  0x3b   :  { %599 = vmatpush3.bf16.msra.mxu0 %v598_v62 }
  0xf7   :  { %v757_v20 = vpop.f32.mrb[0].mxu1 }
  0xf8   :  { %v759_v21 = vpop.f32.mrb[1].mxu1  ;;  %v113_v25 = vpack.c.bf16 %v757_v20, %v757_v20  ;;  %v167_v9 = vadd.f32 %v757_v20, %v716_v2 }
  0xf9   :  { %v540_v22 = vpop.f32.mrb[2].mxu1  ;;  %v165_v10 = vadd.f32 %v759_v21, %v706_v0 }
  0xfa   :  { %v761_v23 = vpop.f32.mrb[3].mxu1  ;;  %v115_v26 = vsel %vm60_vm1, %v113_v25, 0 }
  0xfb   :  { %v112_v24 = vpack.c.bf16 %v761_v23, %v759_v21  ;;  %v166_v2 = vadd.f32 %v761_v23, %v711_v1 }
  0xfd   :  { %541 = vmatprep.subr.bf16.mxu1 %v112_v24 }
  0xfe   :  { %542 = vmatpush3.bf16.msra.mxu1 %v112_v24 }
  0xff   :  { %613 = vmatprep.subr.msk.bf16.mxu1 %vm60_vm1, %v113_v25 }
 0x102   :  { %544 = vmatpush3.bf16.msra.mxu1 %v115_v26 }
 0x103   :  { %600 = vmatprep.subr.bf16.mxu1 %v649_v5 }
 0x105   :  { %546 = vmatmul.mubr.msk.bf16.vlgmr.msra.gmra.mrb[4].mxu1 %vm53_vm0, %v620_v7  ;;  %v356_v7 = vld [vmem:[%s938_s6 + $0x18] sm:$0xff] }
 0x106   :  { %602 = vmatpush3.bf16.msra.mxu1 %v601_v6  ;;  %v604_v8 = vpack.c.bf16 %v356_v7, %v355_v4  ;;  %565 = vmatprep.mubr.msk.f32.mxu1 %vm650_vm2, %v651_v43 }
 0x107   :  { %603 = vmatprep.subr.bf16.mxu1 %v649_v5 }
 0x10a   :  { %605 = vmatpush3.bf16.msra.mxu1 %v604_v8 }
 0x10b   :  { %606 = vmatprep.subr.bf16.mxu1 %v649_v5 }
 0x10e   :  { %608 = vmatpush3.bf16.msra.mxu1 %v607_v39 }
 0x10f   :  { %609 = vmatprep.subr.bf16.mxu1 %v649_v5 }
 0x112   :  { %611 = vmatpush3.bf16.msra.mxu1 %v610_v42 }
 0x1d8   :  { %v547_v11 = vpop.f32.mrb[4].mxu1 }
 0x1d9   :  { %v170_v12 = vadd.f32 %v547_v11, %v167_v9  ;;  %v151_v13 = vpop.f32.mrb[5].mxu1 }
 0x1da   :  { %v168_v14 = vadd.f32 %v165_v10, %v151_v13  ;;  %v548_v15 = vpop.f32.mrb[6].mxu1 }
 0x1db   :  { %v173_v0 = vmul.f32 0.33333334, %v170_v12  ;;  %v154_v16 = vpop.f32.mrb[7].mxu1 }
 0x1dc   :  { %v171_v17 = vmul.f32 0.33333334, %v168_v14  ;;  %v169_v18 = vadd.f32 %v166_v2, %v154_v16 }
 0x1dd   :  { %176 = vst [vmem:[#allocation2 + $0x10] sm:$0xff] %v173_v0 }
 0x1de   :  { %174 = vst [vmem:[#allocation2] sm:$0xff] %v171_v17  ;;  %v172_v1 = vmul.f32 0.33333334, %v169_v18 }
 0x1e0   :  { %175 = vst [vmem:[#allocation2 + $0x8] sm:$0xff] %v172_v1 }
 0x1e7   :  { %v180_v19 = vld [vmem:[%s179_s30] sm:$0x1] }
 0x1e8   :  { %v188_v20 = vld [vmem:[%s187_s9] sm:$0x1]  ;;  %181 = vst [vmem:[#allocation3] sm:$0x1] %v180_v19 }
 0x1e9   :  { %v196_v21 = vld [vmem:[%s195_s10] sm:$0x1]  ;;  %189 = vst [vmem:[#allocation3 + $0x1] sm:$0x1] %v188_v20 }
 0x1ea   :  { %v204_v22 = vld [vmem:[%s203_s11] sm:$0x1]  ;;  %197 = vst [vmem:[#allocation3 + $0x2] sm:$0x1] %v196_v21 }
 0x1eb   :  { %v212_v23 = vld [vmem:[%s211_s12] sm:$0x1]  ;;  %205 = vst [vmem:[#allocation3 + $0x3] sm:$0x1] %v204_v22 }
 0x1ec   :  { %v220_v24 = vld [vmem:[%s219_s13] sm:$0x1]  ;;  %213 = vst [vmem:[#allocation3 + $0x4] sm:$0x1] %v212_v23 }
 0x1ed   :  { %v228_v25 = vld [vmem:[%s227_s0] sm:$0x1]  ;;  %221 = vst [vmem:[#allocation3 + $0x5] sm:$0x1] %v220_v24 }
 0x1ee   :  { %v236_v26 = vld [vmem:[%s235_s1] sm:$0x1]  ;;  %229 = vst [vmem:[#allocation3 + $0x6] sm:$0x1] %v228_v25 }
 0x1ef   :  { %v183_v27 = vld [vmem:[%s182_s14] sm:$0x1]  ;;  %237 = vst [vmem:[#allocation3 + $0x7] sm:$0x1] %v236_v26 }
 0x1f0   :  { %184 = vst [vmem:[#allocation3 + $0x8] sm:$0x1] %v183_v27  ;;  %v191_v28 = vld [vmem:[%s190_s4] sm:$0x1] }
 0x1f1   :  { %v199_v29 = vld [vmem:[%s198_s15] sm:$0x1]  ;;  %192 = vst [vmem:[#allocation3 + $0x9] sm:$0x1] %v191_v28 }
 0x1f2   :  { %v207_v30 = vld [vmem:[%s206_s16] sm:$0x1]  ;;  %200 = vst [vmem:[#allocation3 + $0xa] sm:$0x1] %v199_v29 }
 0x1f3   :  { %208 = vst [vmem:[#allocation3 + $0xb] sm:$0x1] %v207_v30  ;;  %v215_v31 = vld [vmem:[%s214_s17] sm:$0x1] }
 0x1f4   :  { %v223_v32 = vld [vmem:[%s222_s18] sm:$0x1]  ;;  %216 = vst [vmem:[#allocation3 + $0xc] sm:$0x1] %v215_v31 }
 0x1f5   :  { %v231_v33 = vld [vmem:[%s230_s19] sm:$0x1]  ;;  %224 = vst [vmem:[#allocation3 + $0xd] sm:$0x1] %v223_v32 }
 0x1f6   :  { %232 = vst [vmem:[#allocation3 + $0xe] sm:$0x1] %v231_v33  ;;  %v239_v34 = vld [vmem:[%s238_s20] sm:$0x1]  ;;  %v241_v35 = vld [vmem:[#allocation3] sm:$0xff] }
 0x1f7   :  { %240 = vst [vmem:[#allocation3 + $0xf] sm:$0x1] %v239_v34 }
 0x1fe   :  { %v242_v36 = vld [vmem:[#allocation3 + $0x8] sm:$0xff] }
 0x1ff   :  { %346 = vmatprep.mubr.f32.mxu0 %v242_v36 }
 0x200   :  { %347 = vmatmul.mubr.f32.vlgmr.msra.gmra.mrb[0].mxu0 %v241_v35 }
 0x2d3   :  { %v521_v44 = vpop.f32.mrb[0].mxu0 }
 0x2d4   :  { %v522_v46 = vpop.f32.mrb[1].mxu0 }
 0x2d5   :  { %v523_v47 = vadd.f32 %v522_v46, %v521_v44 }
 0x2d7   :  { %v349_v48 = vadd.f32 %v523_v47, %v479_v45 }
 0x2d9   :  { %v352_v49 = vmax.f32 %v349_v48, 0.0 }
 0x2db   :  { %566 = vmatmul.mubr.msk.f32.vlgmr.msra.gmra.mrb[8].mxu1 %vm363_vm3, %v352_v49 }
 0x3ae   :  { %v433_v51 = vpop.f32.mrb[8].mxu1 }
 0x3af   :  { %v434_v52 = vadd.f32 %v433_v51, %v362_v50  ;;  %v567_v53 = vpop.f32.mrb[9].mxu1 }
 0x3b1   :  { %438 = vst.msk [vmem:[%s940_s8] sm:$0xff] %vm437_vm4, %v434_v52 }

</bundles_post_ra>
